<compile_context>
chip_gen: v6e
topology: v6e:2x2x1
jax: 0.10.0
libtpu: 0.0.40
codegen_flags: <defaults>
</compile_context>

<pallas_src>
import functools

import jax
import jax.numpy as jnp
from jax.experimental import pallas as pl
from jax.experimental.pallas import tpu as pltpu


def _round_up(x, m):
    return (x + m - 1) // m * m


# --------------------------------------------------------------------------
# Pallas kernel
# --------------------------------------------------------------------------
def _hinge_kernel(out_ref, y_ref, *rest, margin, p, n_rows, n_cols, tb, has_weight):
    if has_weight:
        w_ref, loss_ref = rest
    else:
        (loss_ref,) = rest

    i = pl.program_id(0)
    x = out_ref[...]                                 # (tb, Cp) f32 scores tile
    y = y_ref[...]                                   # (tb, 1)  i32 labels tile
    tb_rows, cp = x.shape

    col = jax.lax.broadcasted_iota(jnp.int32, (tb_rows, cp), 1)
    row = jax.lax.broadcasted_iota(jnp.int32, (tb_rows, cp), 0) + i * tb

    # One-hot of the target class; "gather" the target score with a masked
    # row-sum instead of a cross-lane gather.
    onehot = col == y                                # (tb, Cp) bool
    out_y = jnp.sum(jnp.where(onehot, x, 0.0), axis=-1, keepdims=True)

    hinge = x - out_y + margin
    # Mask: zero the target column (loss[arange(B), y] = 0) and all padding
    # (padded classes >= n_cols, padded rows >= n_rows).
    valid = jnp.logical_and(
        jnp.logical_and(col < n_cols, row < n_rows),
        jnp.logical_not(onehot),
    )
    hinge = jnp.maximum(jnp.where(valid, hinge, 0.0), 0.0)

    if p == 2:
        hinge = hinge * hinge
    elif p != 1:
        hinge = hinge ** p
    if has_weight:
        hinge = hinge * w_ref[...]                   # (1, Cp) broadcast over rows

    partial = jnp.sum(hinge)                         # in-kernel full reduction

    @pl.when(i == 0)
    def _():
        loss_ref[0, 0] = 0.0

    loss_ref[0, 0] = loss_ref[0, 0] + partial


# --------------------------------------------------------------------------
# Wrapper
# --------------------------------------------------------------------------
def multi_class_hinge_loss(output, y, weight=None, *, p=2, margin=0.2,
                           size_average=True, block_rows=256):
    """Pallas TPU implementation of multiClassHingeLoss.forward."""
    B, C = output.shape

    # Lane-dense class dim (multiple of 128); sublane-aligned row tiles.
    cp = _round_up(max(C, 128), 128)
    tb = _round_up(min(block_rows, _round_up(B, 8)), 8)
    bp = _round_up(B, tb)
    num_tiles = bp // tb

    x = jnp.pad(output.astype(jnp.float32), ((0, bp - B), (0, cp - C)))
    yy = jnp.pad(y.astype(jnp.int32), (0, bp - B)).reshape(bp, 1)

    has_weight = weight is not None
    args = [x, yy]
    in_specs = [
        pl.BlockSpec((tb, cp), lambda i: (i, 0)),
        pl.BlockSpec((tb, 1), lambda i: (i, 0)),
    ]
    if has_weight:
        w = jnp.pad(weight.astype(jnp.float32).reshape(1, C),
                    ((0, 0), (0, cp - C)))
        args.append(w)
        in_specs.append(pl.BlockSpec((1, cp), lambda i: (0, 0)))

    kernel = functools.partial(
        _hinge_kernel,
        margin=float(margin), p=p, n_rows=B, n_cols=C, tb=tb,
        has_weight=has_weight,
    )

    total = pl.pallas_call(
        kernel,
        out_shape=jax.ShapeDtypeStruct((1, 1), jnp.float32),
        grid=(num_tiles,),
        in_specs=in_specs,
        # Scalar loss accumulator lives in SMEM for the whole grid; the grid
        # axis is a reduction over batch tiles -> "arbitrary".
        out_specs=pl.BlockSpec(memory_space=pltpu.MemorySpace.SMEM),
        compiler_params=pltpu.CompilerParams(
            dimension_semantics=("arbitrary",),
            vmem_limit_bytes=32 * 1024 * 1024,  # far below v7x's 64 MiB budget
        ),
    )(*args)

    loss = total[0, 0]
    if size_average:
        loss = loss / B
    return loss


# --------------------------------------------------------------------------
# Pure-JAX reference (mirrors the PyTorch module)
# --------------------------------------------------------------------------
def _hinge_loss_ref(output, y, weight=None, *, p=2, margin=0.2, size_average=True):
    b = output.shape[0]
    out_y = output[jnp.arange(b), y][:, None]
    loss = output - out_y + margin
    loss = loss.at[jnp.arange(b), y].set(0.0)
    loss = jnp.maximum(loss, 0.0)
    if p != 1:
        loss = loss ** p
    if weight is not None:
        loss = loss * weight
    total = jnp.sum(loss)
    if size_average:
        total = total / b
    return total


# --------------------------------------------------------------------------
# Demo
# --------------------------------------------------------------------------
if __name__ == "__main__":
    batch, num_classes = 64, 10

    key = jax.random.PRNGKey(0)
    k_out, k_y, k_w = jax.random.split(key, 3)
    output = jax.random.normal(k_out, (batch, num_classes), jnp.float32)
    y = jax.random.randint(k_y, (batch,), 0, num_classes, jnp.int32)

    loss_fn = jax.jit(
        multi_class_hinge_loss,
        static_argnames=("p", "margin", "size_average", "block_rows"),
    )

    # Unweighted (module defaults: p=2, margin=0.2, weight=None, size_average=True).
    # block_rows=32 -> 2 grid steps, exercises the tiled/accumulating path.
    loss = loss_fn(output, y, p=2, margin=0.2, size_average=True, block_rows=32)
    jax.block_until_ready(loss)
    ref = _hinge_loss_ref(output, y, p=2, margin=0.2, size_average=True)
    assert abs(float(loss) - float(ref)) < 1e-4 * max(1.0, abs(float(ref))), (
        float(loss), float(ref))

    # Weighted variant (exercises the optional per-class weight path).
    weight = jax.random.uniform(k_w, (num_classes,), jnp.float32, 0.5, 1.5)
    loss_w = loss_fn(output, y, weight, p=2, margin=0.2, size_average=True,
                     block_rows=32)
    jax.block_until_ready(loss_w)
    ref_w = _hinge_loss_ref(output, y, weight, p=2, margin=0.2, size_average=True)
    assert abs(float(loss_w) - float(ref_w)) < 1e-4 * max(1.0, abs(float(ref_w))), (
        float(loss_w), float(ref_w))

    print("KERNEL_OK")
</pallas_src>

<mosaic_0001>
module attributes {stable_mosaic.version = 11 : i64} {
  func.func @_hinge_kernel(%arg0: i32, %arg1: memref<32x128xf32, #tpu.memory_space<vmem>>, %arg2: memref<32x1xi32, #tpu.memory_space<vmem>>, %arg3: memref<1x1xf32, #tpu.memory_space<smem>>) attributes {dimension_semantics = [#tpu.dimension_semantics<arbitrary>], iteration_bounds = array<i64: 2>, scalar_prefetch = 0 : i64, scratch_operands = 0 : i64, tpu.core_type = #tpu.core_type<tc>, window_params = [{transform_indices = @transform_0, window_bounds = array<i64: 32, 128>}, {transform_indices = @transform_1, window_bounds = array<i64: 32, 1>}, {transform_indices = @transform_2, window_bounds = array<i64: 1, 1>}]} {
    %c0 = arith.constant 0 : index
    %c0_0 = arith.constant 0 : index
    %0 = vector.load %arg1[%c0, %c0_0] : memref<32x128xf32, #tpu.memory_space<vmem>>, vector<32x128xf32>
    %c0_1 = arith.constant 0 : index
    %c0_2 = arith.constant 0 : index
    %1 = vector.load %arg2[%c0_1, %c0_2] : memref<32x1xi32, #tpu.memory_space<vmem>>, vector<32x1xi32>
    %2 = tpu.iota {dimensions = array<i32: 1>} : vector<32x128xi32>
    %3 = tpu.iota {dimensions = array<i32: 0>} : vector<32x128xi32>
    %c32_i32 = arith.constant 32 : i32
    %4 = arith.muli %arg0, %c32_i32 : i32
    %5 = vector.broadcast %4 : i32 to vector<32x128xi32>
    %6 = arith.addi %3, %5 : vector<32x128xi32>
    %7 = vector.broadcast %1 : vector<32x1xi32> to vector<32x128xi32>
    %8 = arith.cmpi eq, %2, %7 : vector<32x128xi32>
    %cst = arith.constant 0.000000e+00 : f32
    %9 = vector.broadcast %cst : f32 to vector<32x128xf32>
    %10 = arith.select %8, %0, %9 : vector<32x128xi1>, vector<32x128xf32>
    %cst_3 = arith.constant dense<0.000000e+00> : vector<32xf32>
    %11 = vector.multi_reduction <add>, %10, %cst_3 [1] : vector<32x128xf32> to vector<32xf32>
    %12 = vector.shape_cast %11 : vector<32xf32> to vector<32x1xf32>
    %13 = vector.broadcast %12 : vector<32x1xf32> to vector<32x128xf32>
    %14 = arith.subf %0, %13 : vector<32x128xf32>
    %cst_4 = arith.constant 2.000000e-01 : f32
    %15 = vector.broadcast %cst_4 : f32 to vector<32x128xf32>
    %16 = arith.addf %14, %15 : vector<32x128xf32>
    %c10_i32 = arith.constant 10 : i32
    %17 = vector.broadcast %c10_i32 : i32 to vector<32x128xi32>
    %18 = arith.cmpi slt, %2, %17 : vector<32x128xi32>
    %c64_i32 = arith.constant 64 : i32
    %19 = vector.broadcast %c64_i32 : i32 to vector<32x128xi32>
    %20 = arith.cmpi slt, %6, %19 : vector<32x128xi32>
    %21 = arith.andi %18, %20 : vector<32x128xi1>
    %cst_5 = arith.constant dense<true> : vector<32x128xi1>
    %22 = arith.xori %8, %cst_5 : vector<32x128xi1>
    %23 = arith.andi %21, %22 : vector<32x128xi1>
    %cst_6 = arith.constant 0.000000e+00 : f32
    %24 = vector.broadcast %cst_6 : f32 to vector<32x128xf32>
    %25 = arith.select %23, %16, %24 : vector<32x128xi1>, vector<32x128xf32>
    %cst_7 = arith.constant 0.000000e+00 : f32
    %26 = vector.broadcast %cst_7 : f32 to vector<32x128xf32>
    %27 = arith.maximumf %25, %26 : vector<32x128xf32>
    %28 = arith.mulf %27, %27 : vector<32x128xf32>
    %29 = vector.shape_cast %28 : vector<32x128xf32> to vector<1x32x128xf32>
    %cst_8 = arith.constant dense<0.000000e+00> : vector<1xf32>
    %30 = vector.multi_reduction <add>, %29, %cst_8 [1, 2] : vector<1x32x128xf32> to vector<1xf32>
    %31 = vector.shape_cast %30 : vector<1xf32> to vector<1x1x1xf32>
    %32 = vector.extract %31[0, 0, 0] : f32 from vector<1x1x1xf32>
    %c0_i32 = arith.constant 0 : i32
    %33 = arith.cmpi eq, %arg0, %c0_i32 : i32
    %34 = arith.extui %33 : i1 to i32
    %c0_i32_9 = arith.constant 0 : i32
    %35 = arith.cmpi ne, %34, %c0_i32_9 : i32
    scf.if %35 {
      %cst_14 = arith.constant 0.000000e+00 : f32
      %c0_15 = arith.constant 0 : index
      %c0_16 = arith.constant 0 : index
      %39 = memref.load %arg3[%c0_15, %c0_16] : memref<1x1xf32, #tpu.memory_space<smem>>
      memref.store %cst_14, %arg3[%c0_15, %c0_16] : memref<1x1xf32, #tpu.memory_space<smem>>
    } else {
    }
    %c0_10 = arith.constant 0 : index
    %c0_11 = arith.constant 0 : index
    %36 = memref.load %arg3[%c0_10, %c0_11] : memref<1x1xf32, #tpu.memory_space<smem>>
    %37 = arith.addf %36, %32 : f32
    %c0_12 = arith.constant 0 : index
    %c0_13 = arith.constant 0 : index
    %38 = memref.load %arg3[%c0_12, %c0_13] : memref<1x1xf32, #tpu.memory_space<smem>>
    memref.store %37, %arg3[%c0_12, %c0_13] : memref<1x1xf32, #tpu.memory_space<smem>>
    return
  }
  func.func @transform_0(%arg0: i32) -> (i32, i32) {
    %c0_i32 = arith.constant 0 : i32
    %c0_i32_0 = arith.constant 0 : i32
    return %arg0, %c0_i32 : i32, i32
  }
  func.func @transform_1(%arg0: i32) -> (i32, i32) {
    %c0_i32 = arith.constant 0 : i32
    %c0_i32_0 = arith.constant 0 : i32
    return %arg0, %c0_i32 : i32, i32
  }
  func.func @transform_2(%arg0: i32) -> (i32, i32) {
    %c0_i32 = arith.constant 0 : i32
    %c0_i32_0 = arith.constant 0 : i32
    %c0_i32_1 = arith.constant 0 : i32
    return %c0_i32, %c0_i32_0 : i32, i32
  }
}

</mosaic_0001>

<bundles_post_ra>
// kernel: multi_class_hinge_loss.1
= control target key start
LH: loop header
LB: loop body
LE: loop exit
PB: predicated region body
PF: predicated region fallthrough
CT: control target
= control target key end

     0   :  { %7 = vsyncpa [#allocation3], 0  ;;  %s399_s9 = smov 0   ;;  %s498_s0 = inlined_call_operand.vmem [shape: f32[64,128], index: 0, kind: input, shape index: {}]   ;;  %s499_s1 = inlined_call_operand.vmem [shape: s32[64,1], index: 1, kind: input, shape index: {}]   ;;  %s500_s2 = inlined_call_operand.hbm [shape: f32[1,1], index: 2, kind: output, shape index: {}]  }
   0x1 LB: > { %s405_s10 = sadd.s32 4294967295, %s378_s9   ;;  %p322_p0 = scmp.ge.s32.totalorder %s378_s9, 1  ;;  %s378_s9 = sphi %s399_s9, %s13_s9  }
   0x2   : > { %p120_p1 = scmp.lt.s32.totalorder %s378_s9, 3 }
   0x4   : > { %p121_p2 = pnand %p322_p0, %p120_p1 }
   0x5   : > { %s323_s11 = sshll.u32 (!%p121_p2), %s405_s10, 2  ;;  %s327_s16 = sshll.u32 (!%p121_p2), %s405_s10, 5 }
   0x6   : > { %124 = sbr.rel (%p121_p2) target bundleno = 505 (0x1f9), region = 28  ;;  %p143_p3 = scmp.lt.s32.totalorder (!%p121_p2), %s323_s11, 7 }
   0x7   : > { %p341_p4 = scmp.eq.s32.totalorder (!%p121_p2), %s405_s10, 0  ;;  %s382_s20 = smov (!%p121_p2), 0.0  }
   0x8   : > { %p342_p5 = scmp.eq.s32.totalorder (!%p121_p2), %s405_s10, 1  ;;  %s383_s24 = smov (!%p121_p2), [#allocation2]  }
   0xb   : > { %v380_v0 = vmov 0   ;;  %s518_s11 = smov (!%p143_p3, %s323_s11), 7  ;;  %v162_v5 = vlaneseq  ;;  %v170_v8 = vstv %s327_s16  ;;  %vm381_vm11 = vmmov 1   ;;  %336 = sst [smem:[#allocation2]] (%p341_p4), %s382_s20 }
   0xc   : > { %357 = vset.pattern.permute.xlu1 %v380_v0  ;;  %356 = vset.pattern.permute.xlu0 %v380_v0  ;;  %s324_s12 = sshll.u32 %s518_s11, 3  ;;  %s258_s21 = sld [smem:[#allocation2]] }
   0xd   : > { %s152_s15 = scalar_lea.vmem %s499_s1, %s324_s12  ;;  %v165_v6 = vshrl.u32 %v162_v5, 7  ;;  %v163_v11 = vand.u32 127, %v162_v5  ;;  %s417_s19 = scalar_lea.vmem %s498_s0, %s324_s12 }
   0xe   : > { %v160_v1 = vld [vmem:[%s152_s15 + $0x10] sm:$0xff]  ;;  %v158_v2 = vld [vmem:[%s152_s15] sm:$0xff]  ;;  %v161_v3 = vld [vmem:[%s152_s15 + $0x18] sm:$0xff] }
   0xf   : > { %182 = vperm.xlu1 %357, %v160_v1   ;;  %176 = vperm.xlu0 %356, %v158_v2   ;;  %v159_v4 = vld [vmem:[%s152_s15 + $0x8] sm:$0xff]  ;;  %v167_v7 = vadd.s32 16, %v165_v6  ;;  %v168_v9 = vadd.s32 24, %v165_v6  ;;  %v166_v10 = vadd.s32 8, %v165_v6  ;;  %v171_v12 = vadd.s32 %v170_v8, %v165_v6  ;;  %v154_v18 = vld [vmem:[%s417_s19] sm:$0xff]  ;;  %v156_v23 = vld [vmem:[%s417_s19 + $0x10] sm:$0xff] }
  0x10   : > { %vm211_vm0 = vcmp.lt.s32.totalorder %v163_v11, 10  ;;  %v155_v26 = vld [vmem:[%s417_s19 + $0x8] sm:$0xff]  ;;  %v157_v33 = vld [vmem:[%s417_s19 + $0x18] sm:$0xff] }
  0x11   : > { %v173_v13 = vadd.s32 %v170_v8, %v167_v7  ;;  %v174_v14 = vadd.s32 %v170_v8, %v168_v9  ;;  %v172_v15 = vadd.s32 %v170_v8, %v166_v10  ;;  %vm212_vm1 = vcmp.lt.s32.totalorder %v171_v12, 64 }
  0x12   : > { %vm419_vm4 = vmand %vm211_vm0, %vm212_vm1 }
  0x13   : > { %185 = vperm.xlu1 %357, %v161_v3   ;;  %179 = vperm.xlu0 %356, %v159_v4   ;;  %vm214_vm2 = vcmp.lt.s32.totalorder %v173_v13, 64  ;;  %vm215_vm3 = vcmp.lt.s32.totalorder %v174_v14, 64  ;;  %vm213_vm5 = vcmp.lt.s32.totalorder %v172_v15, 64 }
  0x14   : > { %vm423_vm6 = vmand %vm211_vm0, %vm214_vm2 }
  0x15   : > { %vm428_vm7 = vmand %vm211_vm0, %vm215_vm3 }
  0x16   : > { %vm432_vm10 = vmand %vm211_vm0, %vm213_vm5 }
  0x8a   : > { %v183_v19 = vpop.permute.xlu1 %182  ;;  %v177_v20 = vpop.permute.xlu0 %176 }
  0x8b   : > { %vm189_vm8 = vcmp.eq.s32.totalorder %v163_v11, %v183_v19  ;;  %vm187_vm9 = vcmp.eq.s32.totalorder %v163_v11, %v177_v20 }
  0x8c   : > { %vm438_vm12 = vmxor %vm189_vm8, %vm381_vm11  ;;  %v191_v25 = vsel %vm187_vm9, %v154_v18, 0.0  ;;  %v193_v30 = vsel %vm189_vm8, %v156_v23, 0.0 }
  0x8d   : > { %vm226_vm13 = vmand %vm423_vm6, %vm438_vm12  ;;  %195 = vadd.xlane.f32.xlu0 %v191_v25 }
  0x8e   : > { %vm448_vm14 = vmxor %vm187_vm9, %vm381_vm11  ;;  %v186_v28 = vpop.permute.xlu1 %185  ;;  %v180_v29 = vpop.permute.xlu0 %179 }
  0x8f   : > { %vm224_vm15 = vmand %vm419_vm4, %vm448_vm14  ;;  %vm190_vm0 = vcmp.eq.s32.totalorder %v163_v11, %v186_v28  ;;  %vm188_vm1 = vcmp.eq.s32.totalorder %v163_v11, %v180_v29 }
  0x90   : > { %vm457_vm2 = vmxor %vm190_vm0, %vm381_vm11  ;;  %v192_v32 = vsel %vm188_vm1, %v155_v26, 0.0  ;;  %v194_v35 = vsel %vm190_vm0, %v157_v33, 0.0 }
  0x91   : > { %vm227_vm3 = vmand %vm428_vm7, %vm457_vm2  ;;  %197 = vadd.xlane.f32.xlu1 %v192_v32  ;;  %199 = vadd.xlane.f32.xlu0 %v193_v30 }
  0x92   : > { %vm467_vm5 = vmxor %vm188_vm1, %vm381_vm11 }
  0x93   : > { %vm225_vm8 = vmand %vm432_vm10, %vm467_vm5 }
  0x95   : > { %201 = vadd.xlane.f32.xlu0 %v194_v35 }
 0x116   : > { %v196_v36 = vpop.xlane.xlu0 %195 }
 0x117   : > { %v203_v37 = vsub.f32 %v154_v18, %v196_v36 }
 0x119   : > { %v207_v38 = vadd.f32 0.2, %v203_v37 }
 0x11a   : > { %v198_v39 = vpop.xlane.xlu1 %197  ;;  %v200_v40 = vpop.xlane.xlu0 %199 }
 0x11b   : > { %v228_v41 = vsel %vm224_vm15, %v207_v38, 0.0  ;;  %v204_v42 = vsub.f32 %v155_v26, %v198_v39  ;;  %v205_v43 = vsub.f32 %v156_v23, %v200_v40 }
 0x11c   : > { %v232_v46 = vmax.f32 %v228_v41, 0.0 }
 0x11d   : > { %v208_v44 = vadd.f32 0.2, %v204_v42  ;;  %v209_v45 = vadd.f32 0.2, %v205_v43 }
 0x11e   : > { %v202_v47 = vpop.xlane.xlu0 %201  ;;  %v236_v54 = vmul.f32 %v232_v46, %v232_v46 }
 0x11f   : > { %v229_v48 = vsel %vm225_vm8, %v208_v44, 0.0  ;;  %v230_v49 = vsel %vm226_vm13, %v209_v45, 0.0  ;;  %v206_v50 = vsub.f32 %v157_v33, %v202_v47 }
 0x120   : > { %v233_v51 = vmax.f32 %v229_v48, 0.0  ;;  %v234_v52 = vmax.f32 %v230_v49, 0.0 }
 0x121   : > { %v210_v53 = vadd.f32 0.2, %v206_v50 }
 0x122   : > { %v237_v55 = vmul.f32 %v233_v51, %v233_v51  ;;  %v238_v57 = vmul.f32 %v234_v52, %v234_v52 }
 0x123   : > { %v231_v56 = vsel %vm227_vm3, %v210_v53, 0.0 }
 0x124   : > { %v235_v58 = vmax.f32 %v231_v56, 0.0  ;;  %v240_v59 = vadd.f32 %v237_v55, %v236_v54 }
 0x126   : > { %v239_v60 = vmul.f32 %v235_v58, %v235_v58  ;;  %v241_v61 = vadd.f32 %v240_v59, %v238_v57 }
 0x128   : > { %v242_v62 = vadd.f32 %v241_v61, %v239_v60 }
 0x12a   : > { %243 = vadd.xlane.f32.xlu1 %v242_v62 }
 0x1b3   : > { %v244_v63 = vpop.xlane.xlu1 %243 }
 0x1b4   : > { %v245_v0 = vrot.slane %v244_v63, 4 }
 0x1b6   : > { %v246_v1 = vadd.f32 %v245_v0, %v244_v63 }
 0x1b8   : > { %v247_v2 = vrot.slane %v246_v1, 2 }
 0x1ba   : > { %v248_v3 = vadd.f32 %v247_v2, %v246_v1 }
 0x1bc   : > { %v249_v4 = vrot.slane %v248_v3, 1 }
 0x1be   : > { %v250_v5 = vadd.f32 %v249_v4, %v248_v3 }
 0x1c0   : > { %333 = vpush %v250_v5 }
 0x1f1   : > { %s334_s22 = spop %333 }
 0x1f2   : > { %s259_s23 = sadd.f32 %s334_s22, %s258_s21 }
 0x1f4   : > { %261 = sst [smem:[#allocation2]] %s259_s23 }
 0x1f5   : > { %338 = dma.smem_to_hbm (%p342_p5), %s383_s24, 16, %s500_s2, [#allocation3]  }
 0x1f6   : > { %373 = dma.done.wait (%p342_p5), [#allocation3], 16  }
 0x1f7   : > { %375 = vsyncadd (%p342_p5), [#allocation3], 4294967280 }
 0x1f8   : > { %275 = sfence }
 0x1f9 PF: > { %s13_s9 = sadd.s32 1, %s378_s9  }
 0x1fa   : > { %p10_p6 = scmp.ge.s32.totalorder %s13_s9, 4  }
 0x1fc   :  { %12 = sbr.rel (!%p10_p6) target bundleno = 1 (0x1), region = 64 }
 0x201   :  { %281 = vsyncpa [#allocation3], 1 }
 0x202   :  { %283 = vsyncpa [#allocation3 + $0x1], 1 }

</bundles_post_ra>
